<compile_context>
chip_gen: v7x
topology: tpu7x:2x2x1
jax: 0.10.0
libtpu: 0.0.40
codegen_flags: <defaults>
</compile_context>

<pallas_src>
import jax
import jax.numpy as jnp
from jax.experimental import pallas as pl
from jax.experimental.pallas import tpu as pltpu


def _round_up(x, m):
    return ((x + m - 1) // m) * m


def _cdiv(a, b):
    return (a + b - 1) // b


def coupling_kernel(mask_ref, w1o_ref, w1z_ref, b1_ref, w2s_ref, w2t_ref,
                    b2s_ref, b2t_ref, o_ref, z_ref, out_ref):
    TB, D = z_ref.shape
    DP = out_ref.shape[-1]            # round_up(D + 1, 128)
    Hp = w2s_ref.shape[0]             # round_up(H, 128)
    cd = w1o_ref.dtype                # compute dtype for MXU operands

    # ---- layer 1: two MXU dots (o / z read once, cast in-kernel; the binary
    # mask is pre-folded into the z-rows of w1z, so z is passed raw) ----
    h = (jnp.dot(o_ref[...].astype(cd), w1o_ref[...],
                 preferred_element_type=jnp.float32)
         + jnp.dot(z_ref[...].astype(cd), w1z_ref[...],
                   preferred_element_type=jnp.float32)
         + b1_ref[...])
    h = jnp.maximum(h, 0.0)                                   # (TB, 2*Hp) f32

    # hs|ht boundary sits on a lane-tile multiple (Hp % 128 == 0): free views.
    hs = h[:, :Hp].astype(cd)
    ht = h[:, Hp:].astype(cd)

    # ---- layer 2: two lane-aligned dots (no zero block-diagonal waste) ----
    s = jnp.tanh(jnp.dot(hs, w2s_ref[...], preferred_element_type=jnp.float32)
                 + b2s_ref[...])                              # (TB, DP); 0 on pad lanes
    t = (jnp.dot(ht, w2t_ref[...], preferred_element_type=jnp.float32)
         + b2t_ref[...])                                      # (TB, DP); 0 on pad lanes

    # Widen z to the padded output width in-kernel (keeps the HBM read at D
    # lanes); padded lanes carry zeros.
    z = z_ref[...]                                            # f32, exact pass-through
    z_pad = jnp.concatenate([z, jnp.zeros((TB, DP - D), z.dtype)], axis=-1)

    keep = mask_ref[...] != 0.0                               # (1, DP) bool
    y = jnp.where(keep, z_pad, z_pad * jnp.exp(s) + t)        # (TB, DP)

    # log-det of the coupling: sum_d (1 - mask_d) * s_d  (pad lanes contribute 0)
    logdet = jnp.sum(jnp.where(keep, 0.0, s), axis=-1, keepdims=True)  # (TB, 1)

    # Fold the per-row log-det into lane D of the lane-dense output slab:
    # single unmasked, 128-lane-aligned store + one contiguous writeback DMA.
    lane = jax.lax.broadcasted_iota(jnp.int32, (1, DP), 1)
    out_ref[...] = jnp.where(lane == D, logdet, y)


def _device_tuning():
    """(max batch-tile rows, vmem_limit_bytes) for the local TPU generation."""
    try:
        kind = jax.devices()[0].device_kind.lower()
    except Exception:  # pragma: no cover - defensive
        kind = ""
    if "v5" in kind or "v6" in kind:        # 128 MiB physical VMEM
        return 1024, 64 * 1024 * 1024
    return 512, 32 * 1024 * 1024            # v7x (64 MiB physical) / unknown


def _pick_tiling(B, target_rows, min_steps=4):
    """Batch tile (multiple of 8, <= target_rows) aiming for >= min_steps grid
    steps when the batch allows it; returns (tile, padded_batch)."""
    n_steps = max(min_steps, _cdiv(B, target_rows))
    tb = _round_up(_cdiv(B, n_steps), 8)
    tb = min(tb, _round_up(target_rows, 8))
    n_steps = _cdiv(B, tb)
    return tb, n_steps * tb


def conditional_coupling_forward(params, o, z, log_prob, *, batch_tile=None,
                                 compute_dtype=jnp.bfloat16):
    """Forward pass of ConditionalCouplingTransformLayer: (o, z, log_prob) -> (y, log_prob)."""
    mask, ws1, bs1, ws2, bs2, wt1, bt1, wt2, bt2 = params
    B, D = z.shape
    C = o.shape[-1]
    H = ws1.shape[-1]
    Hp = _round_up(H, 128)        # lane-align the hs|ht boundary
    DP = _round_up(D + 1, 128)    # lane-dense output; lane D carries the log-det
    cd = compute_dtype

    target_rows, vmem_limit = _device_tuning()
    if batch_tile is None:
        TB, B_pad = _pick_tiling(B, target_rows)
    else:
        TB = batch_tile
        assert TB % 8 == 0, "batch tile must be a multiple of 8"
        B_pad = _round_up(B, TB)

    pad_c = lambda a, c: jnp.pad(a, ((0, 0), (0, c - a.shape[1])))
    pad_rc = lambda a, r, c: jnp.pad(a, ((0, r - a.shape[0]), (0, c - a.shape[1])))

    # ---- host-side parameter fusion / lane padding (cheap, once per call) ----
    mask_row = mask.reshape(1, D).astype(jnp.float32)
    mask_col = mask.reshape(D, 1).astype(jnp.float32)
    # layer-1 weights, column-fused [s | t] with the t block at lane offset Hp
    w1o = jnp.concatenate([pad_c(ws1[:C], Hp), pad_c(wt1[:C], Hp)],
                          axis=1).astype(cd)                      # (C, 2Hp)
    w1z = jnp.concatenate([pad_c(ws1[C:] * mask_col, Hp),
                           pad_c(wt1[C:] * mask_col, Hp)],
                          axis=1).astype(cd)                      # (D, 2Hp), mask folded
    b1 = jnp.concatenate([pad_c(bs1, Hp), pad_c(bt1, Hp)],
                         axis=1).astype(jnp.float32)              # (1, 2Hp)
    w2s = pad_rc(ws2, Hp, DP).astype(cd)                          # (Hp, DP)
    w2t = pad_rc(wt2, Hp, DP).astype(cd)                          # (Hp, DP)
    b2s = pad_c(bs2, DP).astype(jnp.float32)                      # (1, DP)
    b2t = pad_c(bt2, DP).astype(jnp.float32)                      # (1, DP)
    mask_pad = pad_c(mask_row, DP)                                # (1, DP)

    # pad batch to a multiple of the tile (keeps pipeline + sublane rule)
    o_in = o if B_pad == B else jnp.pad(o, ((0, B_pad - B), (0, 0)))
    z_in = z if B_pad == B else jnp.pad(z, ((0, B_pad - B), (0, 0)))

    fixed = lambda *shape: pl.BlockSpec(shape, lambda i: (0,) * len(shape))
    batched = lambda cols: pl.BlockSpec((TB, cols), lambda i: (i, 0))

    wbytes = jnp.dtype(cd).itemsize
    cost = pl.CostEstimate(
        flops=2 * B_pad * 2 * Hp * (C + D) + 2 * B_pad * 2 * Hp * DP,
        transcendentals=2 * B_pad * DP,                           # tanh + exp
        bytes_accessed=(o_in.size * o_in.dtype.itemsize
                        + z_in.size * z_in.dtype.itemsize
                        + (w1o.size + w1z.size + w2s.size + w2t.size) * wbytes
                        + (b1.size + b2s.size + b2t.size + mask_pad.size) * 4
                        + B_pad * DP * 4),
    )

    out = pl.pallas_call(
        coupling_kernel,
        out_shape=jax.ShapeDtypeStruct((B_pad, DP), jnp.float32),
        grid=(B_pad // TB,),
        in_specs=[
            fixed(1, DP),            # mask (lane padded)
            fixed(C, 2 * Hp),        # W1 rows that see o   ([s | t] columns)
            fixed(D, 2 * Hp),        # W1 rows that see z   (mask folded in)
            fixed(1, 2 * Hp),        # fused b1
            fixed(Hp, DP),           # s-net layer-2 weight (lane padded)
            fixed(Hp, DP),           # t-net layer-2 weight (lane padded)
            fixed(1, DP),            # b2 (s)
            fixed(1, DP),            # b2 (t)
            batched(C),              # o (single read; cast in-kernel)
            batched(D),              # z (single f32 read; exact pass-through)
        ],
        out_specs=batched(DP),       # [ y | log-det | pad ] lane-dense slab
        compiler_params=pltpu.CompilerParams(
            dimension_semantics=("parallel",),
            vmem_limit_bytes=vmem_limit,
        ),
        cost_estimate=cost,
    )(mask_pad, w1o, w1z, b1, w2s, w2t, b2s, b2t, o_in, z_in)

    y = out[:B, :D].astype(z.dtype)
    lp_out = (log_prob.astype(jnp.float32) + out[:B, D]).astype(log_prob.dtype)
    return y, lp_out


def make_params(key, dimension, cond_dim, hidden):
    """Deterministic synthetic parameters (checkerboard mask + 2-layer MLPs)."""
    D, C, H = dimension, cond_dim, hidden
    ks = jax.random.split(key, 8)
    init = lambda k, shape, fan_in: (jax.random.normal(k, shape, jnp.float32)
                                     * (1.0 / jnp.sqrt(fan_in)))
    mask = (jnp.arange(D) % 2).astype(jnp.float32)            # checkerboard mask
    ws1 = init(ks[0], (C + D, H), C + D)
    bs1 = init(ks[1], (1, H), H) * 0.1
    ws2 = init(ks[2], (H, D), H)
    bs2 = init(ks[3], (1, D), D) * 0.1
    wt1 = init(ks[4], (C + D, H), C + D)
    bt1 = init(ks[5], (1, H), H) * 0.1
    wt2 = init(ks[6], (H, D), H)
    bt2 = init(ks[7], (1, D), D) * 0.1
    return (mask, ws1, bs1, ws2, bs2, wt1, bt1, wt2, bt2)


def _reference(params, o, z, log_prob, compute_dtype=jnp.float32):
    """Pure-JAX reference.  compute_dtype=float32 -> exact module semantics;
    compute_dtype=bfloat16 -> mirrors the kernel's mixed-precision policy."""
    mask, ws1, bs1, ws2, bs2, wt1, bt1, wt2, bt2 = params
    cd = compute_dtype
    hp = jax.lax.Precision.HIGHEST
    net_in = jnp.concatenate([o, mask * z], axis=-1).astype(cd)
    hs = jnp.maximum(jnp.dot(net_in, ws1.astype(cd),
                             preferred_element_type=jnp.float32, precision=hp) + bs1, 0.0)
    ht = jnp.maximum(jnp.dot(net_in, wt1.astype(cd),
                             preferred_element_type=jnp.float32, precision=hp) + bt1, 0.0)
    s = jnp.tanh(jnp.dot(hs.astype(cd), ws2.astype(cd),
                         preferred_element_type=jnp.float32, precision=hp) + bs2)
    t = jnp.dot(ht.astype(cd), wt2.astype(cd),
                preferred_element_type=jnp.float32, precision=hp) + bt2
    y = jnp.where(mask != 0.0, z, z * jnp.exp(s) + t)
    lp = log_prob + jnp.sum(jnp.where(mask != 0.0, 0.0, s), axis=-1)
    return y, lp


if __name__ == "__main__":
    key = jax.random.PRNGKey(0)
    # (B, D, C, H): base case, a non-multiple-of-8 batch (exercises padding),
    # and a batch large enough for a multi-step grid (exercises tiling).
    for (B, D, C, H) in [(8, 16, 8, 32), (10, 16, 8, 32), (48, 16, 8, 32)]:
        k_params, k_o, k_z, k_lp, key = jax.random.split(key, 5)
        params = make_params(k_params, D, C, H)
        o = jax.random.normal(k_o, (B, C), jnp.float32)
        z = jax.random.normal(k_z, (B, D), jnp.float32)
        log_prob = jax.random.normal(k_lp, (B,), jnp.float32)

        # f32 compute path: validates exact module semantics.
        y32, lp32 = conditional_coupling_forward(params, o, z, log_prob,
                                                 compute_dtype=jnp.float32)
        # bf16 compute path (production default): precision-matched reference.
        y16, lp16 = conditional_coupling_forward(params, o, z, log_prob)
        jax.block_until_ready((y32, lp32, y16, lp16))

        y_ref32, lp_ref32 = _reference(params, o, z, log_prob, jnp.float32)
        y_ref16, lp_ref16 = _reference(params, o, z, log_prob, jnp.bfloat16)

        assert jnp.allclose(y32, y_ref32, atol=2e-3, rtol=2e-3)
        assert jnp.allclose(lp32, lp_ref32, atol=2e-3, rtol=2e-3)
        assert jnp.allclose(y16, y_ref16, atol=2e-2, rtol=2e-2)
        assert jnp.allclose(lp16, lp_ref16, atol=2e-2, rtol=2e-2)

    print("KERNEL_OK")
</pallas_src>

<mosaic_0001>
module attributes {stable_mosaic.version = 11 : i64} {
  func.func @coupling_kernel(%arg0: i32, %arg1: memref<1x128xf32, #tpu.memory_space<vmem>>, %arg2: memref<8x256xf32, #tpu.memory_space<vmem>>, %arg3: memref<16x256xf32, #tpu.memory_space<vmem>>, %arg4: memref<1x256xf32, #tpu.memory_space<vmem>>, %arg5: memref<128x128xf32, #tpu.memory_space<vmem>>, %arg6: memref<128x128xf32, #tpu.memory_space<vmem>>, %arg7: memref<1x128xf32, #tpu.memory_space<vmem>>, %arg8: memref<1x128xf32, #tpu.memory_space<vmem>>, %arg9: memref<8x8xf32, #tpu.memory_space<vmem>>, %arg10: memref<8x16xf32, #tpu.memory_space<vmem>>, %arg11: memref<8x128xf32, #tpu.memory_space<vmem>>) attributes {dimension_semantics = [#tpu.dimension_semantics<parallel>], iteration_bounds = array<i64: 1>, scalar_prefetch = 0 : i64, scratch_operands = 0 : i64, tpu.core_type = #tpu.core_type<tc>, window_params = [{pipeline_mode = #tpu.pipeline_mode<synchronous>, transform_indices = @transform_0, window_bounds = array<i64: 1, 128>}, {pipeline_mode = #tpu.pipeline_mode<synchronous>, transform_indices = @transform_1, window_bounds = array<i64: 8, 256>}, {pipeline_mode = #tpu.pipeline_mode<synchronous>, transform_indices = @transform_2, window_bounds = array<i64: 16, 256>}, {pipeline_mode = #tpu.pipeline_mode<synchronous>, transform_indices = @transform_3, window_bounds = array<i64: 1, 256>}, {pipeline_mode = #tpu.pipeline_mode<synchronous>, transform_indices = @transform_4, window_bounds = array<i64: 128, 128>}, {pipeline_mode = #tpu.pipeline_mode<synchronous>, transform_indices = @transform_5, window_bounds = array<i64: 128, 128>}, {pipeline_mode = #tpu.pipeline_mode<synchronous>, transform_indices = @transform_6, window_bounds = array<i64: 1, 128>}, {pipeline_mode = #tpu.pipeline_mode<synchronous>, transform_indices = @transform_7, window_bounds = array<i64: 1, 128>}, {transform_indices = @transform_8, window_bounds = array<i64: 8, 8>}, {transform_indices = @transform_9, window_bounds = array<i64: 8, 16>}, {transform_indices = @transform_10, window_bounds = array<i64: 8, 128>}]} {
    %c0 = arith.constant 0 : index
    %c0_0 = arith.constant 0 : index
    %0 = vector.load %arg9[%c0, %c0_0] : memref<8x8xf32, #tpu.memory_space<vmem>>, vector<8x8xf32>
    %c0_1 = arith.constant 0 : index
    %c0_2 = arith.constant 0 : index
    %1 = vector.load %arg2[%c0_1, %c0_2] : memref<8x256xf32, #tpu.memory_space<vmem>>, vector<8x256xf32>
    %cst = arith.constant dense<0.000000e+00> : vector<8x256xf32>
    %2 = tpu.matmul %0, %1, %cst {dimension_numbers = #tpu.dot_dimension_numbers<[1], [0], [0], [1], [0, 0, 1, 1], [], []>} : vector<8x8xf32>, vector<8x256xf32>, vector<8x256xf32> -> vector<8x256xf32>
    %c0_3 = arith.constant 0 : index
    %c0_4 = arith.constant 0 : index
    %3 = vector.load %arg10[%c0_3, %c0_4] : memref<8x16xf32, #tpu.memory_space<vmem>>, vector<8x16xf32>
    %c0_5 = arith.constant 0 : index
    %c0_6 = arith.constant 0 : index
    %4 = vector.load %arg3[%c0_5, %c0_6] : memref<16x256xf32, #tpu.memory_space<vmem>>, vector<16x256xf32>
    %cst_7 = arith.constant dense<0.000000e+00> : vector<8x256xf32>
    %5 = tpu.matmul %3, %4, %cst_7 {dimension_numbers = #tpu.dot_dimension_numbers<[1], [0], [0], [1], [0, 0, 1, 1], [], []>} : vector<8x16xf32>, vector<16x256xf32>, vector<8x256xf32> -> vector<8x256xf32>
    %6 = arith.addf %2, %5 : vector<8x256xf32>
    %c0_8 = arith.constant 0 : index
    %c0_9 = arith.constant 0 : index
    %7 = vector.load %arg4[%c0_8, %c0_9] : memref<1x256xf32, #tpu.memory_space<vmem>>, vector<1x256xf32>
    %8 = vector.broadcast %7 : vector<1x256xf32> to vector<8x256xf32>
    %9 = arith.addf %6, %8 : vector<8x256xf32>
    %cst_10 = arith.constant 0.000000e+00 : f32
    %10 = vector.broadcast %cst_10 : f32 to vector<8x256xf32>
    %11 = arith.maximumf %9, %10 : vector<8x256xf32>
    %12 = vector.extract_strided_slice %11 {offsets = [0, 0], sizes = [8, 128], strides = [1, 1]} : vector<8x256xf32> to vector<8x128xf32>
    %13 = vector.extract_strided_slice %11 {offsets = [0, 128], sizes = [8, 128], strides = [1, 1]} : vector<8x256xf32> to vector<8x128xf32>
    %c0_11 = arith.constant 0 : index
    %c0_12 = arith.constant 0 : index
    %14 = vector.load %arg5[%c0_11, %c0_12] : memref<128x128xf32, #tpu.memory_space<vmem>>, vector<128x128xf32>
    %cst_13 = arith.constant dense<0.000000e+00> : vector<8x128xf32>
    %15 = tpu.matmul %12, %14, %cst_13 {dimension_numbers = #tpu.dot_dimension_numbers<[1], [0], [0], [1], [0, 0, 1, 1], [], []>} : vector<8x128xf32>, vector<128x128xf32>, vector<8x128xf32> -> vector<8x128xf32>
    %c0_14 = arith.constant 0 : index
    %c0_15 = arith.constant 0 : index
    %16 = vector.load %arg7[%c0_14, %c0_15] : memref<1x128xf32, #tpu.memory_space<vmem>>, vector<1x128xf32>
    %17 = vector.broadcast %16 : vector<1x128xf32> to vector<8x128xf32>
    %18 = arith.addf %15, %17 : vector<8x128xf32>
    %19 = math.tanh %18 : vector<8x128xf32>
    %c0_16 = arith.constant 0 : index
    %c0_17 = arith.constant 0 : index
    %20 = vector.load %arg6[%c0_16, %c0_17] : memref<128x128xf32, #tpu.memory_space<vmem>>, vector<128x128xf32>
    %cst_18 = arith.constant dense<0.000000e+00> : vector<8x128xf32>
    %21 = tpu.matmul %13, %20, %cst_18 {dimension_numbers = #tpu.dot_dimension_numbers<[1], [0], [0], [1], [0, 0, 1, 1], [], []>} : vector<8x128xf32>, vector<128x128xf32>, vector<8x128xf32> -> vector<8x128xf32>
    %c0_19 = arith.constant 0 : index
    %c0_20 = arith.constant 0 : index
    %22 = vector.load %arg8[%c0_19, %c0_20] : memref<1x128xf32, #tpu.memory_space<vmem>>, vector<1x128xf32>
    %23 = vector.broadcast %22 : vector<1x128xf32> to vector<8x128xf32>
    %24 = arith.addf %21, %23 : vector<8x128xf32>
    %c0_21 = arith.constant 0 : index
    %c0_22 = arith.constant 0 : index
    %25 = vector.load %arg10[%c0_21, %c0_22] : memref<8x16xf32, #tpu.memory_space<vmem>>, vector<8x16xf32>
    %cst_23 = arith.constant 0.000000e+00 : f32
    %26 = vector.broadcast %cst_23 : f32 to vector<8x112xf32>
    %27 = tpu.concatenate %25, %26 in 1 : vector<8x16xf32>, vector<8x112xf32> -> vector<8x128xf32>
    %c0_24 = arith.constant 0 : index
    %c0_25 = arith.constant 0 : index
    %28 = vector.load %arg1[%c0_24, %c0_25] : memref<1x128xf32, #tpu.memory_space<vmem>>, vector<1x128xf32>
    %cst_26 = arith.constant 0.000000e+00 : f32
    %29 = vector.broadcast %cst_26 : f32 to vector<1x128xf32>
    %30 = arith.cmpf one, %28, %29 : vector<1x128xf32>
    %31 = math.exp %19 : vector<8x128xf32>
    %32 = arith.mulf %27, %31 : vector<8x128xf32>
    %33 = arith.addf %32, %24 : vector<8x128xf32>
    %34 = vector.shape_cast %30 : vector<1x128xi1> to vector<1x128xi1>
    %35 = vector.broadcast %34 : vector<1x128xi1> to vector<8x128xi1>
    %36 = arith.select %35, %27, %33 : vector<8x128xi1>, vector<8x128xf32>
    %cst_27 = arith.constant 0.000000e+00 : f32
    %37 = vector.shape_cast %30 : vector<1x128xi1> to vector<1x128xi1>
    %38 = vector.broadcast %37 : vector<1x128xi1> to vector<8x128xi1>
    %39 = vector.broadcast %cst_27 : f32 to vector<8x128xf32>
    %40 = arith.select %38, %39, %19 : vector<8x128xi1>, vector<8x128xf32>
    %cst_28 = arith.constant dense<0.000000e+00> : vector<8xf32>
    %41 = vector.multi_reduction <add>, %40, %cst_28 [1] : vector<8x128xf32> to vector<8xf32>
    %42 = vector.shape_cast %41 : vector<8xf32> to vector<8x1xf32>
    %43 = tpu.iota {dimensions = array<i32: 1>} : vector<1x128xi32>
    %c16_i32 = arith.constant 16 : i32
    %44 = vector.broadcast %c16_i32 : i32 to vector<1x128xi32>
    %45 = arith.cmpi eq, %43, %44 : vector<1x128xi32>
    %46 = vector.shape_cast %45 : vector<1x128xi1> to vector<1x128xi1>
    %47 = vector.broadcast %46 : vector<1x128xi1> to vector<8x128xi1>
    %48 = vector.shape_cast %42 : vector<8x1xf32> to vector<8x1xf32>
    %49 = vector.broadcast %48 : vector<8x1xf32> to vector<8x128xf32>
    %50 = arith.select %47, %49, %36 : vector<8x128xi1>, vector<8x128xf32>
    %c0_29 = arith.constant 0 : index
    %c0_30 = arith.constant 0 : index
    %51 = vector.load %arg11[%c0_29, %c0_30] : memref<8x128xf32, #tpu.memory_space<vmem>>, vector<8x128xf32>
    tpu.vector_store %arg11[%c0_29, %c0_30], %50 {strides = array<i32>} : memref<8x128xf32, #tpu.memory_space<vmem>>, vector<8x128xf32>,
    return
  }
  func.func @transform_0(%arg0: i32) -> (i32, i32) {
    %c0_i32 = arith.constant 0 : i32
    %c0_i32_0 = arith.constant 0 : i32
    %c0_i32_1 = arith.constant 0 : i32
    return %c0_i32, %c0_i32_0 : i32, i32
  }
  func.func @transform_1(%arg0: i32) -> (i32, i32) {
    %c0_i32 = arith.constant 0 : i32
    %c0_i32_0 = arith.constant 0 : i32
    %c0_i32_1 = arith.constant 0 : i32
    return %c0_i32, %c0_i32_0 : i32, i32
  }
  func.func @transform_2(%arg0: i32) -> (i32, i32) {
    %c0_i32 = arith.constant 0 : i32
    %c0_i32_0 = arith.constant 0 : i32
    %c0_i32_1 = arith.constant 0 : i32
    return %c0_i32, %c0_i32_0 : i32, i32
  }
  func.func @transform_3(%arg0: i32) -> (i32, i32) {
    %c0_i32 = arith.constant 0 : i32
    %c0_i32_0 = arith.constant 0 : i32
    %c0_i32_1 = arith.constant 0 : i32
    return %c0_i32, %c0_i32_0 : i32, i32
  }
  func.func @transform_4(%arg0: i32) -> (i32, i32) {
    %c0_i32 = arith.constant 0 : i32
    %c0_i32_0 = arith.constant 0 : i32
    %c0_i32_1 = arith.constant 0 : i32
    return %c0_i32, %c0_i32_0 : i32, i32
  }
  func.func @transform_5(%arg0: i32) -> (i32, i32) {
    %c0_i32 = arith.constant 0 : i32
    %c0_i32_0 = arith.constant 0 : i32
    %c0_i32_1 = arith.constant 0 : i32
    return %c0_i32, %c0_i32_0 : i32, i32
  }
  func.func @transform_6(%arg0: i32) -> (i32, i32) {
    %c0_i32 = arith.constant 0 : i32
    %c0_i32_0 = arith.constant 0 : i32
    %c0_i32_1 = arith.constant 0 : i32
    return %c0_i32, %c0_i32_0 : i32, i32
  }
  func.func @transform_7(%arg0: i32) -> (i32, i32) {
    %c0_i32 = arith.constant 0 : i32
    %c0_i32_0 = arith.constant 0 : i32
    %c0_i32_1 = arith.constant 0 : i32
    return %c0_i32, %c0_i32_0 : i32, i32
  }
  func.func @transform_8(%arg0: i32) -> (i32, i32) {
    %c0_i32 = arith.constant 0 : i32
    %c0_i32_0 = arith.constant 0 : i32
    return %arg0, %c0_i32 : i32, i32
  }
  func.func @transform_9(%arg0: i32) -> (i32, i32) {
    %c0_i32 = arith.constant 0 : i32
    %c0_i32_0 = arith.constant 0 : i32
    return %arg0, %c0_i32 : i32, i32
  }
  func.func @transform_10(%arg0: i32) -> (i32, i32) {
    %c0_i32 = arith.constant 0 : i32
    %c0_i32_0 = arith.constant 0 : i32
    return %arg0, %c0_i32 : i32, i32
  }
}

</mosaic_0001>

<bundles_post_ra>
// kernel: tpu_custom_call.1
= control target key start
LH: loop header
LB: loop body
LE: loop exit
PB: predicated region body
PF: predicated region fallthrough
CT: control target
= control target key end

     0   :  { %15 = vsyncpa [#allocation3], 0  ;;  %s1024_s0 = inlined_call_operand.hbm [shape: f32[1,128], index: 0, kind: input, shape index: {}]   ;;  %s1025_s1 = inlined_call_operand.hbm [shape: f32[8,256], index: 1, kind: input, shape index: {}]   ;;  %s1026_s2 = inlined_call_operand.hbm [shape: f32[16,256], index: 2, kind: input, shape index: {}]   ;;  %s1027_s3 = inlined_call_operand.vmem [shape: f32[1,256], index: 3, kind: input, shape index: {}]   ;;  %s1028_s4 = inlined_call_operand.hbm [shape: f32[128,128], index: 4, kind: input, shape index: {}]   ;;  %s1029_s5 = inlined_call_operand.hbm [shape: f32[128,128], index: 5, kind: input, shape index: {}]   ;;  %s1030_s6 = inlined_call_operand.vmem [shape: f32[1,128], index: 6, kind: input, shape index: {}]   ;;  %s1031_s7 = inlined_call_operand.vmem [shape: f32[1,128], index: 7, kind: input, shape index: {}]   ;;  %s1032_s8 = inlined_call_operand.vmem [shape: f32[8,8], index: 8, kind: input, shape index: {}]   ;;  %s1033_s9 = inlined_call_operand.vmem [shape: f32[8,16], index: 9, kind: input, shape index: {}]   ;;  %s1034_s10 = inlined_call_operand.hbm [shape: f32[8,128], index: 10, kind: output, shape index: {}]  }
   0x1   :  { %16 = vsyncpa [#allocation6], 0 }
   0x2   :  { %17 = vsyncpa [#allocation9], 0 }
   0x3   :  { %18 = vsyncpa [#allocation4], 0  ;;  %s822_s13 = smov [#allocation5]   ;;  %s823_s15 = smov [#allocation8]  }
   0x4   :  { %s35_s14 = sshll.u32 %s822_s13, 4  ;;  %s58_s16 = sshll.u32 %s823_s15, 4  ;;  %s36_s14 = int_to_ptr.vmem [resolvable:$true] %s35_s14  ;;  %s891_s16 = int_to_ptr.vmem [resolvable:$true] %s58_s16 }
   0x5   :  { %s682_s19 = scalar_lea.hbm %s1025_s1, 256 }
   0x6   :  { %p683_p0 = scmp.ne.s32.totalorder %s1025_s1, %s682_s19  ;;  %p686_p1 = scmp.lt.u32.totalorder %s682_s19, %s1025_s1 }
   0x8   :  { %p688_p2 = pnand %p686_p1, %p683_p0 }
   0xa   :  { %691 = shalt.err (!%p688_p2)
}
   0xb   :  { %s692_s24 = scalar_lea.vmem %s36_s14, 256  ;;  %p697_p4 = scmp.lt.s32.totalorder %s36_s14, %s36_s14 }
   0xc   :  { %p693_p3 = scmp.ne.s32.totalorder %s36_s14, %s692_s24  ;;  %p698_p5 = scmp.lt.s32.totalorder %s692_s24, %s692_s24 }
   0xe   :  { %p699_p6 = por %p698_p5, %p697_p4 }
  0x10   :  { %p700_p7 = pnand %p699_p6, %p693_p3 }
  0x12   :  { %703 = shalt.err (!%p700_p7)
}
  0x13   :  { %38 = dma.hbm_to_vmem [thread:$0]  %s1025_s1, 256, %s36_s14, [#allocation6]  }
  0x14   :  { %s704_s29 = scalar_lea.hbm %s1028_s4, 2048 }
  0x15   :  { %p705_p8 = scmp.ne.s32.totalorder %s1028_s4, %s704_s29  ;;  %p708_p9 = scmp.lt.u32.totalorder %s704_s29, %s1028_s4 }
  0x17   :  { %p710_p10 = pnand %p708_p9, %p705_p8 }
  0x19   :  { %713 = shalt.err (!%p710_p10)
}
  0x1a   :  { %s714_s15 = scalar_lea.vmem %s891_s16, 2048  ;;  %p719_p12 = scmp.lt.s32.totalorder %s891_s16, %s891_s16 }
  0x1b   :  { %p715_p11 = scmp.ne.s32.totalorder %s891_s16, %s714_s15  ;;  %p720_p13 = scmp.lt.s32.totalorder %s714_s15, %s714_s15 }
  0x1d   :  { %p721_p0 = por %p720_p13, %p719_p12 }
  0x1f   :  { %p722_p1 = pnand %p721_p0, %p715_p11 }
  0x21   :  { %725 = shalt.err (!%p722_p1)
}
  0x22   :  { %s824_s1 = smov 128   ;;  %s825_s14 = smov 8  }
  0x23   :  { %64 = dma.hbm_to_vmem [thread:$0]  %s1028_s4, 2048, %s891_s16, [#allocation9], %s824_s1, %s824_s1, %s825_s14  }
  0x24   :  { %s826_s19 = smov [#allocation2]   ;;  %s827_s21 = smov [#allocation7]  }
  0x25   :  { %s25_s20 = sshll.u32 %s826_s19, 4  ;;  %s44_s22 = sshll.u32 %s827_s21, 4  ;;  %s26_s20 = int_to_ptr.vmem [resolvable:$true] %s25_s20  ;;  %s925_s22 = int_to_ptr.vmem [resolvable:$true] %s44_s22 }
  0x26   :  { %s726_s25 = scalar_lea.hbm %s1024_s0, 16 }
  0x27   :  { %p727_p2 = scmp.ne.s32.totalorder %s1024_s0, %s726_s25  ;;  %p730_p3 = scmp.lt.u32.totalorder %s726_s25, %s1024_s0 }
  0x29   :  { %p732_p4 = pnand %p730_p3, %p727_p2 }
  0x2b   :  { %735 = shalt.err (!%p732_p4)
}
  0x2c   :  { %s736_s4 = scalar_lea.vmem %s26_s20, 16  ;;  %s740_s16 = scalar_lea.vmem %s26_s20, 32 }
  0x2d   :  { %p737_p5 = scmp.ne.s32.totalorder %s26_s20, %s736_s4  ;;  %p741_p6 = scmp.lt.s32.totalorder %s26_s20, %s26_s20 }
  0x2e   :  { %p742_p7 = scmp.lt.s32.totalorder %s740_s16, %s736_s4 }
  0x30   :  { %p743_p8 = por %p742_p7, %p741_p6 }
  0x32   :  { %p744_p9 = pnand %p743_p8, %p737_p5 }
  0x34   :  { %747 = shalt.err (!%p744_p9)
}
  0x35   :  { %28 = dma.hbm_to_vmem [thread:$0]  %s1024_s0, 16, %s26_s20, [#allocation3]  }
  0x36   :  { %s748_s15 = scalar_lea.hbm %s1026_s2, 512 }
  0x37   :  { %p749_p10 = scmp.ne.s32.totalorder %s1026_s2, %s748_s15  ;;  %p752_p11 = scmp.lt.u32.totalorder %s748_s15, %s1026_s2 }
  0x39   :  { %p754_p12 = pnand %p752_p11, %p749_p10 }
  0x3b   :  { %757 = shalt.err (!%p754_p12)
}
  0x3c   :  { %s758_s23 = scalar_lea.vmem %s925_s22, 512  ;;  %p763_p0 = scmp.lt.s32.totalorder %s925_s22, %s925_s22 }
  0x3d   :  { %p759_p13 = scmp.ne.s32.totalorder %s925_s22, %s758_s23  ;;  %p764_p1 = scmp.lt.s32.totalorder %s758_s23, %s758_s23 }
  0x3f   :  { %p765_p2 = por %p764_p1, %p763_p0 }
  0x41   :  { %p766_p3 = pnand %p765_p2, %p759_p13 }
  0x43   :  { %769 = shalt.err (!%p766_p3)
}
  0x44   :  { %s828_s0 = smov 256   ;;  %s829_s20 = smov 16  }
  0x45   :  { %50 = dma.hbm_to_vmem [thread:$0]  %s1026_s2, 512, %s925_s22, [#allocation6], %s828_s0, %s828_s0, %s829_s20  }
  0x46   :  { %s830_s26 = smov [#allocation10]   ;;  %s770_s4 = scalar_lea.hbm %s1029_s5, 2048 }
  0x47   :  { %s70_s27 = sshll.u32 %s830_s26, 4  ;;  %p771_p4 = scmp.ne.s32.totalorder %s1029_s5, %s770_s4  ;;  %s71_s27 = int_to_ptr.vmem [resolvable:$true] %s70_s27 }
  0x48   :  { %p774_p5 = scmp.lt.u32.totalorder %s770_s4, %s1029_s5 }
  0x4a   :  { %p776_p6 = pnand %p774_p5, %p771_p4 }
  0x4c   :  { %779 = shalt.err (!%p776_p6)
}
  0x4d   :  { %s780_s13 = scalar_lea.vmem %s71_s27, 2048  ;;  %p785_p8 = scmp.lt.s32.totalorder %s71_s27, %s71_s27 }
  0x4e   :  { %p781_p7 = scmp.ne.s32.totalorder %s71_s27, %s780_s13  ;;  %p786_p9 = scmp.lt.s32.totalorder %s780_s13, %s780_s13 }
  0x50   :  { %p787_p10 = por %p786_p9, %p785_p8 }
  0x52   :  { %p788_p11 = pnand %p787_p10, %p781_p7 }
  0x54   :  { %791 = shalt.err (!%p788_p11)
}
  0x55   :  { %76 = dma.hbm_to_vmem [thread:$0]  %s1029_s5, 2048, %s71_s27, [#allocation9], %s824_s1, %s824_s1, %s825_s14  }
  0x56   :  { %814 = dma.done.wait [#allocation3], 16  }
  0x57   :  { %815 = vsyncadd [#allocation3], 4294967280 }
  0x58   :  { %816 = dma.done.wait [#allocation6], 768  }
  0x59   :  { %817 = vsyncadd [#allocation6], 4294966528 }
  0x5a   :  { %818 = dma.done.wait [#allocation9], 4096  }
  0x5b   :  { %819 = vsyncadd [#allocation9], 4294963200  ;;  %v831_v0 = vmov 0.0   ;;  %v105_v1 = vld [vmem:[#allocation7 + $0x8] sm:$0xff]  ;;  %v107_v2 = vld [vmem:[#allocation7 + $0x18] sm:$0xff]  ;;  %vm183_vm0 = vcmask 64512   ;;  %v260_v61 = vlaneseq }
  0x5c   :  { %251 = vmatprep.mubr.f32.mxu0 %v831_v0  ;;  %176 = vmatprep.mubr.f32.mxu1 %v831_v0  ;;  %v104_v3 = vld [vmem:[#allocation7] sm:$0xff]  ;;  %v610_v4 = vpack.c.bf16 %v107_v2, %v105_v1  ;;  %v106_v5 = vld [vmem:[#allocation7 + $0x10] sm:$0xff]  ;;  %v102_v6 = vld [vmem:[#allocation5 + $0x8] sm:$0xff]  ;;  %vm108_vm1 = vcmask 130048   ;;  %v832_v19 = vmov 0.0|0.0   ;;  %vm833_vm2 = vmmov 0  }
  0x5d   :  { %v101_v7 = vld [vmem:[#allocation5] sm:$0xff]  ;;  %v612_v8 = vpack.c.bf16 %v106_v5, %v104_v3  ;;  %187 = vmatprep.subr.mxu0 %v102_v6  ;;  %v274_v11 = vld [vmem:[#allocation8] sm:$0xff]  ;;  %v275_v13 = vld [vmem:[#allocation8 + $0x8] sm:$0xff]  ;;  %v261_v62 = vshrl.u32 %v260_v61, 7 }
  0x5e   :  { %v100_v9 = vld [vmem:[%s1032_s8] sm:$0xff]  ;;  %611 = vmatprep.subr.bf16.mxu1 %v610_v4  ;;  %188 = vmatpush1.msra.mxu0 %v101_v7  ;;  %v368_v14 = vld [vmem:[#allocation10] sm:$0xff]  ;;  %v369_v15 = vld [vmem:[#allocation10 + $0x8] sm:$0xff]  ;;  %v615_v16 = vpack.c.bf16 %v275_v13, %v274_v11 }
  0x5f   :  { %v103_v10 = vld [vmem:[%s1033_s9] sm:$0xff]  ;;  %613 = vmatpush1.bf16.msra.mxu1 %v612_v8  ;;  %503 = vmatmul.mubr.msk.f32.vlgmr.msra.gmra.mrb[0].mxu0 %vm183_vm0, %v100_v9  ;;  %v639_v17 = vpack.c.bf16 %v369_v15, %v368_v14  ;;  %v372_v24 = vld [vmem:[#allocation10 + $0x20] sm:$0xff]  ;;  %v373_v25 = vld [vmem:[#allocation10 + $0x28] sm:$0xff]  ;;  %v262_v63 = vsub.s32 0, %v261_v62  ;;  %v266_v2 = vsub.s32 1, %v261_v62 }
  0x60   :  { %v980_v12 = vsel %vm108_vm1, %v103_v10, 0.0  ;;  %v370_v18 = vld [vmem:[#allocation10 + $0x10] sm:$0xff]  ;;  %614 = vmatprep.subr.bf16.mxu1 %v832_v19  ;;  %638 = vmatprep.subr.bf16.mxu0 %v832_v19  ;;  %v277_v21 = vld [vmem:[#allocation8 + $0x18] sm:$0xff]  ;;  %v278_v27 = vld [vmem:[#allocation8 + $0x20] sm:$0xff]  ;;  %v645_v29 = vpack.c.bf16 %v373_v25, %v372_v24 }
  0x61   :  { %v276_v20 = vld [vmem:[#allocation8 + $0x10] sm:$0xff]  ;;  %v371_v22 = vld [vmem:[#allocation10 + $0x18] sm:$0xff]  ;;  %640 = vmatpush3.bf16.msra.mxu0 %v639_v17  ;;  %v279_v28 = vld [vmem:[#allocation8 + $0x28] sm:$0xff]  ;;  %607 = vmatprep.mubr.msk.f32.mxu0 %vm833_vm2, %v831_v0 }
  0x62   :  { %v642_v23 = vpack.c.bf16 %v371_v22, %v370_v18  ;;  %502 = vmatmul.mubr.msk.f32.vlgmr.msra.gmra.mrb[0].mxu1 %vm108_vm1, %v103_v10  ;;  %641 = vmatprep.subr.bf16.mxu0 %v832_v19  ;;  %v618_v26 = vpack.c.bf16 %v277_v21, %v276_v20  ;;  %v374_v30 = vld [vmem:[#allocation10 + $0x30] sm:$0xff]  ;;  %v375_v31 = vld [vmem:[#allocation10 + $0x38] sm:$0xff]  ;;  %v621_v32 = vpack.c.bf16 %v279_v28, %v278_v27  ;;  %v376_v36 = vld [vmem:[#allocation10 + $0x40] sm:$0xff]  ;;  %v834_v22 = vmov 0  }
  0x63   :  { %616 = vmatpush3.bf16.msra.mxu1 %v615_v16  ;;  %v280_v33 = vld [vmem:[#allocation8 + $0x30] sm:$0xff]  ;;  %v281_v34 = vld [vmem:[#allocation8 + $0x38] sm:$0xff]  ;;  %v648_v35 = vpack.c.bf16 %v375_v31, %v374_v30  ;;  %v377_v37 = vld [vmem:[#allocation10 + $0x48] sm:$0xff]  ;;  %572 = vmatprep.mubr.msk.f32.mxu1 %vm833_vm2, %v831_v0 }
  0x64   :  { %617 = vmatprep.subr.bf16.mxu1 %v832_v19  ;;  %v624_v38 = vpack.c.bf16 %v281_v34, %v280_v33  ;;  %v282_v39 = vld [vmem:[#allocation8 + $0x40] sm:$0xff]  ;;  %v283_v40 = vld [vmem:[#allocation8 + $0x48] sm:$0xff]  ;;  %v651_v41 = vpack.c.bf16 %v377_v37, %v376_v36  ;;  %v378_v42 = vld [vmem:[#allocation10 + $0x50] sm:$0xff]  ;;  %v479_v34 = vand.u32 127, %v260_v61 }
  0x65   :  { %643 = vmatpush3.bf16.msra.mxu0 %v642_v23  ;;  %v379_v43 = vld [vmem:[#allocation10 + $0x58] sm:$0xff]  ;;  %v627_v44 = vpack.c.bf16 %v283_v40, %v282_v39  ;;  %v284_v45 = vld [vmem:[#allocation8 + $0x50] sm:$0xff]  ;;  %v286_v49 = vld [vmem:[#allocation8 + $0x60] sm:$0xff] }
  0x66   :  { %644 = vmatprep.subr.bf16.mxu0 %v832_v19  ;;  %v285_v46 = vld [vmem:[#allocation8 + $0x58] sm:$0xff]  ;;  %v654_v47 = vpack.c.bf16 %v379_v43, %v378_v42  ;;  %v287_v50 = vld [vmem:[#allocation8 + $0x68] sm:$0xff]  ;;  %v380_v52 = vld [vmem:[#allocation10 + $0x60] sm:$0xff]  ;;  %vm480_vm5 = vcmp.eq.s32.totalorder %v479_v34, 16 }
  0x67   :  { %619 = vmatpush3.bf16.msra.mxu1 %v618_v26  ;;  %v630_v48 = vpack.c.bf16 %v285_v46, %v284_v45  ;;  %v633_v51 = vpack.c.bf16 %v287_v50, %v286_v49  ;;  %v381_v53 = vld [vmem:[#allocation10 + $0x68] sm:$0xff]  ;;  %v288_v55 = vld [vmem:[#allocation8 + $0x70] sm:$0xff]  ;;  %v289_v56 = vld [vmem:[#allocation8 + $0x78] sm:$0xff] }
  0x68   :  { %620 = vmatprep.subr.bf16.mxu1 %v832_v19  ;;  %v657_v54 = vpack.c.bf16 %v381_v53, %v380_v52  ;;  %v636_v57 = vpack.c.bf16 %v289_v56, %v288_v55  ;;  %v382_v58 = vld [vmem:[#allocation10 + $0x70] sm:$0xff]  ;;  %v383_v59 = vld [vmem:[#allocation10 + $0x78] sm:$0xff]  ;;  %v462_v16 = vld [vmem:[#allocation2] sm:$0x1] }
  0x69   :  { %646 = vmatpush3.bf16.msra.mxu0 %v645_v29  ;;  %v660_v60 = vpack.c.bf16 %v383_v59, %v382_v58  ;;  %v258_v1 = vld [vmem:[%s1027_s3] sm:$0x3]  ;;  %vm463_vm3 = vcmp.ne.f32.partialorder %v462_v16, 0.0 }
  0x6a   :  { %647 = vmatprep.subr.bf16.mxu0 %v832_v19  ;;  %v263_v5 = vrot.slane %v258_v1, %v262_v63  ;;  %v267_v7 = vrot.slane %v258_v1, %v266_v2  ;;  %v504_v15 = vld [vmem:[%s1030_s6] ss:$0 sm:$0xff]  ;;  %v468_v23 = vsel %vm463_vm3, 1, %v834_v22  ;;  %s835_s6 = smov [#allocation11]  }
  0x6b   :  { %622 = vmatpush3.bf16.msra.mxu1 %v621_v32  ;;  %v472_v24 = vrot.slane %v468_v23, %v262_v63  ;;  %v505_v28 = vld [vmem:[%s1031_s7] ss:$0 sm:$0xff]  ;;  %s491_s21 = sshll.u32 %s835_s6, 4  ;;  %s492_s21 = int_to_ptr.vmem [resolvable:$true] %s491_s21 }
  0x6c   :  { %623 = vmatprep.subr.bf16.mxu1 %v832_v19  ;;  %s792_s23 = scalar_lea.vmem %s492_s21, 128  ;;  %p797_p13 = scmp.lt.s32.totalorder %s492_s21, %s492_s21 }
  0x6d   :  { %649 = vmatpush3.bf16.msra.mxu0 %v648_v35  ;;  %vm473_vm4 = vcmp.eq.s32.totalorder %v472_v24, 1  ;;  %p793_p12 = scmp.ne.s32.totalorder %s492_s21, %s792_s23  ;;  %p798_p0 = scmp.lt.s32.totalorder %s792_s23, %s792_s23 }
  0x6e   :  { %650 = vmatprep.subr.bf16.mxu0 %v832_v19 }
  0x6f   :  { %625 = vmatpush3.bf16.msra.mxu1 %v624_v38  ;;  %p799_p1 = por %p798_p0, %p797_p13 }
  0x70   :  { %626 = vmatprep.subr.bf16.mxu1 %v832_v19 }
  0x71   :  { %652 = vmatpush3.bf16.msra.mxu0 %v651_v41  ;;  %p800_p2 = pnand %p799_p1, %p793_p12 }
  0x72   :  { %653 = vmatprep.subr.bf16.mxu0 %v832_v19 }
  0x73   :  { %628 = vmatpush3.bf16.msra.mxu1 %v627_v44 }
  0x74   :  { %629 = vmatprep.subr.bf16.mxu1 %v832_v19 }
  0x75   :  { %655 = vmatpush3.bf16.msra.mxu0 %v654_v47 }
  0x76   :  { %656 = vmatprep.subr.bf16.mxu0 %v832_v19 }
  0x77   :  { %631 = vmatpush3.bf16.msra.mxu1 %v630_v48 }
  0x78   :  { %632 = vmatprep.subr.bf16.mxu1 %v832_v19 }
  0x79   :  { %658 = vmatpush3.bf16.msra.mxu0 %v657_v54 }
  0x7a   :  { %659 = vmatprep.subr.bf16.mxu0 %v832_v19 }
  0x7b   :  { %634 = vmatpush3.bf16.msra.mxu1 %v633_v51 }
  0x7c   :  { %635 = vmatprep.subr.bf16.mxu1 %v832_v19 }
  0x7d   :  { %661 = vmatpush3.bf16.msra.mxu0 %v660_v60 }
  0x7f   :  { %637 = vmatpush3.bf16.msra.mxu1 %v636_v57 }
 0x132   :  { %v253_v3 = vpop.f32.mrb[0].mxu0 }
 0x133   :  { %v255_v4 = vpop.f32.mrb[1].mxu0 }
 0x135   :  { %v178_v6 = vpop.f32.mrb[0].mxu1 }
 0x136   :  { %v254_v8 = vadd.f32 %v253_v3, %v178_v6  ;;  %v180_v9 = vpop.f32.mrb[1].mxu1 }
 0x137   :  { %v256_v10 = vadd.f32 %v255_v4, %v180_v9 }
 0x138   :  { %v270_v11 = vadd.f32 %v263_v5, %v254_v8 }
 0x139   :  { %v271_v13 = vadd.f32 %v267_v7, %v256_v10 }
 0x13a   :  { %v272_v14 = vmax.f32 %v270_v11, 0.0 }
 0x13b   :  { %v273_v0 = vmax.f32 %v271_v13, 0.0 }
 0x13c   :  { %573 = vmatmul.mubr.f32.vlgmr.msra.gmra.mrb[2].mxu1 %v272_v14 }
 0x13d   :  { %608 = vmatmul.mubr.f32.vlgmr.msra.gmra.mrb[2].mxu0 %v273_v0 }
 0x20f   :  { %v363_v17 = vpop.f32.mrb[2].mxu1 }
 0x210   :  { %v364_v18 = vadd.f32 %v504_v15, %v363_v17  ;;  %v574_v19 = vpop.f32.mrb[3].mxu1  ;;  %v457_v20 = vpop.f32.mrb[2].mxu0 }
 0x211   :  { %v609_v21 = vpop.f32.mrb[3].mxu0  ;;  %v458_v30 = vadd.f32 %v505_v28, %v457_v20 }
 0x212   :  { %678 = vtanh.f32 %v364_v18 }
 0x21c   :  { %v679_v25 = vpop.eup %678 }
 0x21d   :  { %v464_v26 = vmul.f32 1.442695, %v679_v25  ;;  %v475_v27 = vsel %vm473_vm4, 0.0, %v679_v25 }
 0x21e   :  { %476 = vadd.xlane.f32.xlu0 %v475_v27 }
 0x21f   :  { %680 = vpow2.f32 %v464_v26 }
 0x229   :  { %v681_v29 = vpop.eup %680 }
 0x22a   :  { %v466_v31 = vmul.f32 %v681_v29, %v980_v12 }
 0x22c   :  { %v467_v32 = vadd.f32 %v466_v31, %v458_v30 }
 0x22e   :  { %v474_v33 = vsel %vm473_vm4, %v980_v12, %v467_v32 }
 0x2ab   :  { %v477_v35 = vpop.xlane.xlu0 %476 }
 0x2ac   :  { %v483_v36 = vsel %vm480_vm5, %v477_v35, %v474_v33 }
 0x2ad   :  { %484 = vst [vmem:[#allocation11] sm:$0xff] %v483_v36 }
 0x2ae   :  { %803 = shalt.err (!%p800_p2)
}
 0x2af   :  { %s804_s20 = scalar_lea.hbm %s1034_s10, 128 }
 0x2b0   :  { %p805_p3 = scmp.ne.s32.totalorder %s1034_s10, %s804_s20  ;;  %p808_p4 = scmp.lt.u32.totalorder %s804_s20, %s1034_s10 }
 0x2b2   :  { %p810_p5 = pnand %p808_p4, %p805_p3 }
 0x2b4   :  { %813 = shalt.err (!%p810_p5)
}
 0x2b5   :  { %494 = dma.vmem_to_hbm [thread:$0]  %s492_s21, 128, %s1034_s10, [#allocation4]  }
 0x2b6   :  { %820 = dma.done.wait [#allocation4], 128  }
 0x2b7   :  { %821 = vsyncadd [#allocation4], 4294967168 }
 0x2b8   :  { %498 = vsyncpa [#allocation3], 1 }
 0x2b9   :  { %499 = vsyncpa [#allocation6], 1 }
 0x2ba   :  { %500 = vsyncpa [#allocation9], 1 }
 0x2bb   :  { %501 = vsyncpa [#allocation4], 1 }

</bundles_post_ra>
